<compile_context>
chip_gen: v6e
topology: v6e:2x2x1
jax: 0.10.0
libtpu: 0.0.40
codegen_flags: <defaults>
</compile_context>

<pallas_src>
import jax
import jax.numpy as jnp
from jax.experimental import pallas as pl
from jax.experimental.pallas import tpu as pltpu


def qnet_kernel(s_ref, a_ref, w1_ref, b1_ref, w2_ref, b2_ref, w3t_ref, b3_ref,
                o_ref):
    # Fused concat([state, action], axis=1) + single layer-1 matmul: one MXU
    # push/pop instead of two sliver-K matmuls plus a partial-sum add.
    x = jnp.concatenate([s_ref[...], a_ref[...]], axis=-1)
    h1 = jnp.dot(x, w1_ref[...], preferred_element_type=jnp.float32) + b1_ref[...]
    h1 = jnp.maximum(h1, 0.0)

    # linear2 + relu (f32 accumulate, f32 VPU math).
    h2 = jnp.dot(h1, w2_ref[...], preferred_element_type=jnp.float32) + b2_ref[...]
    h2 = jnp.maximum(h2, 0.0)

    # linear3 (out_features == 1): VPU multiply + XLU lane reduction instead of
    # a sliver-width MXU matmul.  w3t/b3 are always f32 (v5e has no bf16 VPU).
    o_ref[...] = jnp.sum(h2 * w3t_ref[...], axis=-1, keepdims=True) + b3_ref[...]


def _pick_batch_block(B, block_rows, min_blocks=2):
    """Largest 8-aligned batch tile <= block_rows that still leaves at least
    `min_blocks` grid steps when the batch is big enough, so v7x's two
    TensorCores both get work under dimension_semantics=("parallel",)."""
    if B < 8 * min_blocks:
        return B                                  # single block == full batch
    split_cap = ((pl.cdiv(B, min_blocks) + 7) // 8) * 8
    TB = min(block_rows, split_cap)
    return max(8, (TB // 8) * 8)


def qnetwork_forward(state, action, params, *, block_rows=2048,
                     storage_dtype=None):
    """Pallas implementation of QNetwork.forward(state, action).

    storage_dtype: optional lower-precision dtype (e.g. jnp.bfloat16) for the
    batch-scaled inputs and the two big weight matrices (MXU operands only);
    accumulation and all elementwise math stay f32.  None => pure f32.
    """
    if action.ndim == 1:
        action = action[:, None]                   # torch: action.unsqueeze(1)

    w1, b1, w2, b2, w3, b3 = params
    mxu_dtype = jnp.float32 if storage_dtype is None else storage_dtype

    state = state.astype(mxu_dtype)
    action = action.astype(mxu_dtype)
    w1 = w1.astype(mxu_dtype)
    w2 = w2.astype(mxu_dtype)
    b1 = b1.astype(jnp.float32)
    b2 = b2.astype(jnp.float32)
    w3t = w3.T.astype(jnp.float32)                 # [1, hidden], lane-reduce head
    b3 = b3.astype(jnp.float32)

    B, num_inputs = state.shape
    num_actions = action.shape[1]
    hidden = w1.shape[1]
    d_in = num_inputs + num_actions
    assert w1.shape[0] == d_in, (w1.shape, d_in)

    TB = _pick_batch_block(B, block_rows)
    n_blocks = pl.cdiv(B, TB)                      # ragged last block is fine:
                                                   # rows are independent, OOB
                                                   # writes are dropped.

    flops = 2 * B * (d_in * hidden + hidden * hidden + hidden)
    param_elems = (d_in + 1) * hidden + (hidden + 1) * hidden + (hidden + 1)
    itemsize = jnp.dtype(mxu_dtype).itemsize
    bytes_accessed = itemsize * B * d_in + 4 * B + 4 * param_elems  # advisory

    # TODO(synk): the SAC twin critics (Q1/Q2) could be fused into one kernel
    # by stacking the layer-1 / layer-3 weights along the output-feature axis
    # (doubling lane/MXU occupancy and halving launch overhead); that changes
    # the single-QNetwork module API, so it is left to the caller.
    # TODO(synk): if hidden is scaled to 512+, add pipeline_mode=pl.Buffered(1)
    # on the grid-invariant weight specs to halve their VMEM residency (v7x's
    # 64 MiB budget) and re-derive TB accordingly.

    out = pl.pallas_call(
        qnet_kernel,
        out_shape=jax.ShapeDtypeStruct((B, 1), jnp.float32),
        grid=(n_blocks,),
        in_specs=[
            pl.BlockSpec((TB, num_inputs), lambda i: (i, 0)),    # state block
            pl.BlockSpec((TB, num_actions), lambda i: (i, 0)),   # action block
            pl.BlockSpec((d_in, hidden), lambda i: (0, 0)),      # w1 (resident)
            pl.BlockSpec((1, hidden), lambda i: (0, 0)),         # b1
            pl.BlockSpec((hidden, hidden), lambda i: (0, 0)),    # w2 (resident)
            pl.BlockSpec((1, hidden), lambda i: (0, 0)),         # b2
            pl.BlockSpec((1, hidden), lambda i: (0, 0)),         # w3^T
            pl.BlockSpec((1, 1), lambda i: (0, 0)),              # b3
        ],
        out_specs=pl.BlockSpec((TB, 1), lambda i: (i, 0)),
        compiler_params=pltpu.CompilerParams(
            dimension_semantics=("parallel",),
            vmem_limit_bytes=32 * 1024 * 1024),
        cost_estimate=pl.CostEstimate(
            flops=flops, transcendentals=0, bytes_accessed=bytes_accessed),
    )(state, action, w1, b1, w2, b2, w3t, b3)

    return out


def init_qnetwork_params(key, num_inputs, num_actions, hidden_size):
    """Deterministic init mimicking nn.Linear's U(-1/sqrt(fan_in), 1/sqrt(fan_in))."""
    d_in = num_inputs + num_actions
    ks = jax.random.split(key, 6)

    def linear(kw, kb, fan_in, fan_out):
        bound = 1.0 / jnp.sqrt(jnp.float32(fan_in))
        w = jax.random.uniform(kw, (fan_in, fan_out), jnp.float32, -bound, bound)
        b = jax.random.uniform(kb, (1, fan_out), jnp.float32, -bound, bound)
        return w, b

    w1, b1 = linear(ks[0], ks[1], d_in, hidden_size)
    w2, b2 = linear(ks[2], ks[3], hidden_size, hidden_size)
    w3, b3 = linear(ks[4], ks[5], hidden_size, 1)
    return (w1, b1, w2, b2, w3, b3)


def qnetwork_ref(state, action, params):
    """Pure-JAX reference for correctness check."""
    if action.ndim == 1:
        action = action[:, None]
    x = jnp.concatenate([state, action], axis=1).astype(jnp.float32)
    w1, b1, w2, b2, w3, b3 = params
    h1 = jnp.maximum(x @ w1 + b1, 0.0)
    h2 = jnp.maximum(h1 @ w2 + b2, 0.0)
    return h2 @ w3 + b3


if __name__ == "__main__":
    # Small shapes consistent with the module's forward. batch=20 exercises
    # both the ragged-last-block path (block_rows=8 -> TB=8, grid=3 with the
    # last block partially OOB) and the >=2-block default path (TB=16, grid=2).
    batch, num_inputs, num_actions, hidden = 20, 12, 4, 32

    key = jax.random.PRNGKey(0)
    k_state, k_action, k_params, k_params1d = jax.random.split(key, 4)

    state = jax.random.normal(k_state, (batch, num_inputs), jnp.float32)
    action = jax.random.normal(k_action, (batch, num_actions), jnp.float32)
    params = init_qnetwork_params(k_params, num_inputs, num_actions, hidden)
    ref = qnetwork_ref(state, action, params)

    # Small-tile path: multi-block grid with a ragged last block (20 = 8+8+4).
    out = jax.block_until_ready(
        qnetwork_forward(state, action, params, block_rows=8))
    assert out.shape == (batch, 1), out.shape
    assert jnp.allclose(out, ref, atol=1e-5, rtol=1e-5), "mismatch vs reference"

    # Default-tile path: tile capped so the grid still has 2 steps (megacore).
    out2 = jax.block_until_ready(qnetwork_forward(state, action, params))
    assert jnp.allclose(out2, ref, atol=1e-5, rtol=1e-5), \
        "mismatch vs reference (default tile)"

    # 1-D action path (torch's action.unsqueeze(1) branch), num_actions == 1.
    params_1d = init_qnetwork_params(k_params1d, num_inputs, 1, hidden)
    action_1d = jax.random.normal(k_action, (batch,), jnp.float32)
    out3 = jax.block_until_ready(qnetwork_forward(state, action_1d, params_1d))
    ref3 = qnetwork_ref(state, action_1d, params_1d)
    assert jnp.allclose(out3, ref3, atol=1e-5, rtol=1e-5), \
        "mismatch vs reference (1-D action)"

    print("KERNEL_OK")
</pallas_src>

<mosaic_0001>
module attributes {stable_mosaic.version = 11 : i64} {
  func.func @qnet_kernel(%arg0: i32, %arg1: memref<8x12xf32, #tpu.memory_space<vmem>>, %arg2: memref<8x4xf32, #tpu.memory_space<vmem>>, %arg3: memref<16x32xf32, #tpu.memory_space<vmem>>, %arg4: memref<1x32xf32, #tpu.memory_space<vmem>>, %arg5: memref<32x32xf32, #tpu.memory_space<vmem>>, %arg6: memref<1x32xf32, #tpu.memory_space<vmem>>, %arg7: memref<1x32xf32, #tpu.memory_space<vmem>>, %arg8: memref<1x1xf32, #tpu.memory_space<vmem>>, %arg9: memref<8x1xf32, #tpu.memory_space<vmem>>) attributes {dimension_semantics = [#tpu.dimension_semantics<parallel>], iteration_bounds = array<i64: 3>, scalar_prefetch = 0 : i64, scratch_operands = 0 : i64, tpu.core_type = #tpu.core_type<tc>, window_params = [{transform_indices = @transform_0, window_bounds = array<i64: 8, 12>}, {transform_indices = @transform_1, window_bounds = array<i64: 8, 4>}, {pipeline_mode = #tpu.pipeline_mode<synchronous>, transform_indices = @transform_2, window_bounds = array<i64: 16, 32>}, {pipeline_mode = #tpu.pipeline_mode<synchronous>, transform_indices = @transform_3, window_bounds = array<i64: 1, 32>}, {pipeline_mode = #tpu.pipeline_mode<synchronous>, transform_indices = @transform_4, window_bounds = array<i64: 32, 32>}, {pipeline_mode = #tpu.pipeline_mode<synchronous>, transform_indices = @transform_5, window_bounds = array<i64: 1, 32>}, {pipeline_mode = #tpu.pipeline_mode<synchronous>, transform_indices = @transform_6, window_bounds = array<i64: 1, 32>}, {pipeline_mode = #tpu.pipeline_mode<synchronous>, transform_indices = @transform_7, window_bounds = array<i64: 1, 1>}, {transform_indices = @transform_8, window_bounds = array<i64: 8, 1>}]} {
    %c0 = arith.constant 0 : index
    %c0_0 = arith.constant 0 : index
    %0 = vector.load %arg1[%c0, %c0_0] : memref<8x12xf32, #tpu.memory_space<vmem>>, vector<8x12xf32>
    %c0_1 = arith.constant 0 : index
    %c0_2 = arith.constant 0 : index
    %1 = vector.load %arg2[%c0_1, %c0_2] : memref<8x4xf32, #tpu.memory_space<vmem>>, vector<8x4xf32>
    %2 = tpu.concatenate %0, %1 in 1 : vector<8x12xf32>, vector<8x4xf32> -> vector<8x16xf32>
    %c0_3 = arith.constant 0 : index
    %c0_4 = arith.constant 0 : index
    %3 = vector.load %arg3[%c0_3, %c0_4] : memref<16x32xf32, #tpu.memory_space<vmem>>, vector<16x32xf32>
    %cst = arith.constant dense<0.000000e+00> : vector<8x32xf32>
    %4 = tpu.matmul %2, %3, %cst {dimension_numbers = #tpu.dot_dimension_numbers<[1], [0], [0], [1], [0, 0, 1, 1], [], []>} : vector<8x16xf32>, vector<16x32xf32>, vector<8x32xf32> -> vector<8x32xf32>
    %c0_5 = arith.constant 0 : index
    %c0_6 = arith.constant 0 : index
    %5 = vector.load %arg4[%c0_5, %c0_6] : memref<1x32xf32, #tpu.memory_space<vmem>>, vector<1x32xf32>
    %6 = vector.broadcast %5 : vector<1x32xf32> to vector<8x32xf32>
    %7 = arith.addf %4, %6 : vector<8x32xf32>
    %cst_7 = arith.constant 0.000000e+00 : f32
    %8 = vector.broadcast %cst_7 : f32 to vector<8x32xf32>
    %9 = arith.maximumf %7, %8 : vector<8x32xf32>
    %c0_8 = arith.constant 0 : index
    %c0_9 = arith.constant 0 : index
    %10 = vector.load %arg5[%c0_8, %c0_9] : memref<32x32xf32, #tpu.memory_space<vmem>>, vector<32x32xf32>
    %cst_10 = arith.constant dense<0.000000e+00> : vector<8x32xf32>
    %11 = tpu.matmul %9, %10, %cst_10 {dimension_numbers = #tpu.dot_dimension_numbers<[1], [0], [0], [1], [0, 0, 1, 1], [], []>} : vector<8x32xf32>, vector<32x32xf32>, vector<8x32xf32> -> vector<8x32xf32>
    %c0_11 = arith.constant 0 : index
    %c0_12 = arith.constant 0 : index
    %12 = vector.load %arg6[%c0_11, %c0_12] : memref<1x32xf32, #tpu.memory_space<vmem>>, vector<1x32xf32>
    %13 = vector.broadcast %12 : vector<1x32xf32> to vector<8x32xf32>
    %14 = arith.addf %11, %13 : vector<8x32xf32>
    %cst_13 = arith.constant 0.000000e+00 : f32
    %15 = vector.broadcast %cst_13 : f32 to vector<8x32xf32>
    %16 = arith.maximumf %14, %15 : vector<8x32xf32>
    %c0_14 = arith.constant 0 : index
    %c0_15 = arith.constant 0 : index
    %17 = vector.load %arg7[%c0_14, %c0_15] : memref<1x32xf32, #tpu.memory_space<vmem>>, vector<1x32xf32>
    %18 = vector.broadcast %17 : vector<1x32xf32> to vector<8x32xf32>
    %19 = arith.mulf %16, %18 : vector<8x32xf32>
    %cst_16 = arith.constant dense<0.000000e+00> : vector<8xf32>
    %20 = vector.multi_reduction <add>, %19, %cst_16 [1] : vector<8x32xf32> to vector<8xf32>
    %21 = vector.shape_cast %20 : vector<8xf32> to vector<8x1xf32>
    %c0_17 = arith.constant 0 : index
    %c0_18 = arith.constant 0 : index
    %22 = vector.load %arg8[%c0_17, %c0_18] : memref<1x1xf32, #tpu.memory_space<vmem>>, vector<1x1xf32>
    %23 = vector.broadcast %22 : vector<1x1xf32> to vector<8x1xf32>
    %24 = arith.addf %21, %23 : vector<8x1xf32>
    %c0_19 = arith.constant 0 : index
    %c0_20 = arith.constant 0 : index
    %25 = vector.load %arg9[%c0_19, %c0_20] : memref<8x1xf32, #tpu.memory_space<vmem>>, vector<8x1xf32>
    tpu.vector_store %arg9[%c0_19, %c0_20], %24 {strides = array<i32>} : memref<8x1xf32, #tpu.memory_space<vmem>>, vector<8x1xf32>,
    return
  }
  func.func @transform_0(%arg0: i32) -> (i32, i32) {
    %c0_i32 = arith.constant 0 : i32
    %c0_i32_0 = arith.constant 0 : i32
    return %arg0, %c0_i32 : i32, i32
  }
  func.func @transform_1(%arg0: i32) -> (i32, i32) {
    %c0_i32 = arith.constant 0 : i32
    %c0_i32_0 = arith.constant 0 : i32
    return %arg0, %c0_i32 : i32, i32
  }
  func.func @transform_2(%arg0: i32) -> (i32, i32) {
    %c0_i32 = arith.constant 0 : i32
    %c0_i32_0 = arith.constant 0 : i32
    %c0_i32_1 = arith.constant 0 : i32
    return %c0_i32, %c0_i32_0 : i32, i32
  }
  func.func @transform_3(%arg0: i32) -> (i32, i32) {
    %c0_i32 = arith.constant 0 : i32
    %c0_i32_0 = arith.constant 0 : i32
    %c0_i32_1 = arith.constant 0 : i32
    return %c0_i32, %c0_i32_0 : i32, i32
  }
  func.func @transform_4(%arg0: i32) -> (i32, i32) {
    %c0_i32 = arith.constant 0 : i32
    %c0_i32_0 = arith.constant 0 : i32
    %c0_i32_1 = arith.constant 0 : i32
    return %c0_i32, %c0_i32_0 : i32, i32
  }
  func.func @transform_5(%arg0: i32) -> (i32, i32) {
    %c0_i32 = arith.constant 0 : i32
    %c0_i32_0 = arith.constant 0 : i32
    %c0_i32_1 = arith.constant 0 : i32
    return %c0_i32, %c0_i32_0 : i32, i32
  }
  func.func @transform_6(%arg0: i32) -> (i32, i32) {
    %c0_i32 = arith.constant 0 : i32
    %c0_i32_0 = arith.constant 0 : i32
    %c0_i32_1 = arith.constant 0 : i32
    return %c0_i32, %c0_i32_0 : i32, i32
  }
  func.func @transform_7(%arg0: i32) -> (i32, i32) {
    %c0_i32 = arith.constant 0 : i32
    %c0_i32_0 = arith.constant 0 : i32
    %c0_i32_1 = arith.constant 0 : i32
    return %c0_i32, %c0_i32_0 : i32, i32
  }
  func.func @transform_8(%arg0: i32) -> (i32, i32) {
    %c0_i32 = arith.constant 0 : i32
    %c0_i32_0 = arith.constant 0 : i32
    return %arg0, %c0_i32 : i32, i32
  }
}

</mosaic_0001>

<bundles_post_ra>
// kernel: tpu_custom_call.1
= control target key start
LH: loop header
LB: loop body
LE: loop exit
PB: predicated region body
PF: predicated region fallthrough
CT: control target
= control target key end

     0   :  { %s696_s29 = smov 0   ;;  %s748_s0 = inlined_call_operand.vmem [shape: f32[20,12], index: 0, kind: input, shape index: {}]   ;;  %s749_s1 = inlined_call_operand.vmem [shape: f32[20,4], index: 1, kind: input, shape index: {}]   ;;  %s750_s2 = inlined_call_operand.vmem [shape: f32[16,32], index: 2, kind: input, shape index: {}]   ;;  %s751_s3 = inlined_call_operand.vmem [shape: f32[1,32], index: 3, kind: input, shape index: {}]   ;;  %s752_s4 = inlined_call_operand.vmem [shape: f32[32,32], index: 4, kind: input, shape index: {}]   ;;  %s753_s5 = inlined_call_operand.vmem [shape: f32[1,32], index: 5, kind: input, shape index: {}]   ;;  %s754_s6 = inlined_call_operand.vmem [shape: f32[1,32], index: 6, kind: input, shape index: {}]   ;;  %s755_s7 = inlined_call_operand.<no memory space> [shape: f32[1,1], index: 7, kind: input, shape index: {}]   ;;  %s756_s8 = inlined_call_operand.vmem [shape: f32[20,1], index: 8, kind: output, shape index: {}]  }
   0x1   :  { %v13_v0 = vstv %s755_s7 }
   0x2   :  { %14 = vst [vmem:[#allocation2] sm:$0x1] %v13_v0 }
   0x3 LB: > { %s584_s30 = sadd.s32 4294967295, %s643_s29   ;;  %p588_p0 = scmp.ge.s32.totalorder %s643_s29, 1  ;;  %s643_s29 = sphi %s696_s29, %s20_s29  }
   0x4   : > { %p272_p1 = scmp.lt.s32.totalorder %s643_s29, 4 }
   0x6   : > { %p273_p2 = pnand %p588_p0, %p272_p1 }
   0x7   : > { %p308_p3 = scmp.lt.s32.totalorder (!%p273_p2), %s584_s30, 2  ;;  %s647_s18 = smov (!%p273_p2), 12  }
   0x8   : > { %276 = sbr.rel (%p273_p2) target bundleno = 672 (0x2a0), region = 52 }
   0xd   : > { %v329_v1 = vld [vmem:[%s750_s2 + $0x8] sm:$0xff]  ;;  %v645_v2 = vmov 0.0   ;;  %v328_v3 = vld [vmem:[%s750_s2] sm:$0xff]  ;;  %v415_v4 = vld [vmem:[%s752_s4 + $0x18] sm:$0xff]  ;;  %s758_s30 = smov (!%p308_p3, %s584_s30), 2  ;;  %vm646_vm0 = vmmov 0  }
   0xe   : > { %608 = vmatprep.subr.mxu0 %v645_v2  ;;  %615 = vmatprep.subr.mxu1 %v645_v2  ;;  %s713_s14 = sshll.u32 %s758_s30, 3  ;;  %vm326_vm1 = vcmask 97280   ;;  %vm337_vm2 = vcmask 130048   ;;  %v414_v9 = vld [vmem:[%s752_s4 + $0x10] sm:$0xff]  ;;  %v413_v10 = vld [vmem:[%s752_s4 + $0x8] sm:$0xff]  ;;  %v412_v11 = vld [vmem:[%s752_s4] sm:$0xff] }
   0xf   : > { %609 = vmatpush3.msra.mxu0 %v329_v1  ;;  %612 = vmatprep.mubr.msk.f32.mxu0 %vm646_vm0, %v645_v2  ;;  %s315_s17 = scalar_lea.vmem %s749_s1, %s713_s14  ;;  %s311_s21 = scalar_lea.vmem %s748_s0, %s713_s14  ;;  %v592_v12 = vld [vmem:[%s751_s3] ss:$0 sm:$0xff]  ;;  %vm423_vm3 = vcmask 261120   ;;  %vm517_vm4 = vcmask 7168  }
  0x10   : > { %610 = vmatprep.subr.mxu0 %v645_v2  ;;  %616 = vmatpush3.msra.mxu1 %v415_v4  ;;  %v321_v5 = vld [vmem:[%s315_s17] sm:$0xff]  ;;  %s319_s15 = scalar_lea.vmem %s756_s8, %s713_s14 }
  0x11   : > { %611 = vmatpush3.msra.mxu0 %v328_v3  ;;  %617 = vmatprep.subr.mxu1 %v645_v2  ;;  %v320_v6 = vld [vmem:[%s311_s21] sm:$0xff] }
  0x12   : > { %623 = vmatprep.mubr.msk.f32.mxu1 %vm646_vm0, %v645_v2  ;;  %323 = vrot.lane.b32.xlu0 %v321_v5, %s647_s18  ;;  %v594_v17 = vld [vmem:[%s753_s5] ss:$0 sm:$0xff] }
  0x13   : > { %618 = vmatpush3.msra.mxu1 %v414_v9  ;;  %v596_v21 = vld [vmem:[%s754_s6] ss:$0 sm:$0xff] }
  0x14   : > { %619 = vmatprep.subr.mxu1 %v645_v2  ;;  %v597_v25 = vld [vmem:[#allocation2] ss:$0 sm:$0xff] }
  0x15   : > { %620 = vmatpush3.msra.mxu1 %v413_v10 }
  0x16   : > { %621 = vmatprep.subr.mxu1 %v645_v2 }
  0x17   : > { %622 = vmatpush3.msra.mxu1 %v412_v11 }
  0x84   : > { %v324_v7 = vpop.permute.xlu0 %323 }
  0x85   : > { %v327_v8 = vsel %vm326_vm1, %v320_v6, %v324_v7 }
  0x86   : > { %613 = vmatmul.mubr.msk.f32.vlgmr.msra.gmra.mxu0 %vm337_vm2, %v327_v8 }
 0x146   : > { %v407_v13 = vpop.f32.mrf.mxu0 }
 0x147   : > { %v408_v14 = vadd.f32 %v592_v12, %v407_v13 }
 0x148   : > { %v614_v15 = vpop.f32.mrf.mxu0 }
 0x149   : > { %v411_v16 = vmax.f32 %v408_v14, 0.0 }
 0x14b   : > { %624 = vmatmul.mubr.msk.f32.vlgmr.msra.gmra.mxu1 %vm423_vm3, %v411_v16 }
 0x20b   : > { %v493_v18 = vpop.f32.mrf.mxu1 }
 0x20c   : > { %v494_v19 = vadd.f32 %v594_v17, %v493_v18 }
 0x20d   : > { %v625_v20 = vpop.f32.mrf.mxu1 }
 0x20e   : > { %v497_v22 = vmax.f32 %v494_v19, 0.0 }
 0x210   : > { %v505_v23 = vmul.f32 %v596_v21, %v497_v22 }
 0x212   : > { %v506_v24 = vsel %vm423_vm3, %v505_v23, 0.0 }
 0x213   : > { %507 = vadd.xlane.f32.xlu0 %v506_v24 }
 0x29c   : > { %v508_v26 = vpop.xlane.xlu0 %507 }
 0x29d   : > { %v516_v27 = vadd.f32 %v597_v25, %v508_v26 }
 0x29f   : > { %518 = vst.msk [vmem:[%s319_s15] sm:$0xff] %vm517_vm4, %v516_v27 }
 0x2a0 PF: > { %s20_s29 = sadd.s32 1, %s643_s29  }
 0x2a1   : > { %p17_p4 = scmp.ge.s32.totalorder %s20_s29, 5  }
 0x2a3   :  { %19 = sbr.rel (!%p17_p4) target bundleno = 3 (0x3), region = 85 }

</bundles_post_ra>
